<compile_context>
chip_gen: v7x
topology: tpu7x:2x2x1
jax: 0.10.0
libtpu: 0.0.40
codegen_flags: <defaults>
</compile_context>

<pallas_src>
import functools

import jax
import jax.numpy as jnp
from jax import lax
from jax.experimental import pallas as pl
from jax.experimental.pallas import tpu as pltpu


def _ga_generalist_kernel(x_ref, w_ref, o_ref):
    # x_ref: (N, 8)   w_ref: (4, 8) [PyTorch Linear layout]   o_ref: (N, 4)
    x = x_ref[...]
    w = w_ref[...]

    # y_t[o, n] = sum_k w[o, k] * x[n, k]  -> (4, N): batch on lanes.
    y_t = lax.dot_general(
        w, x,
        dimension_numbers=(((1,), (1,)), ((), ())),
        preferred_element_type=jnp.float32,
    )

    # Numerically stable softmax over the batch axis (== lane axis here).
    m = jnp.max(y_t, axis=-1, keepdims=True)        # (4, 1)
    e = jnp.exp(y_t - m)                            # (4, N)
    denom = jnp.sum(e, axis=-1, keepdims=True)      # (4, 1)
    sm = e / denom                                  # exact: columns sum to 1

    # Fold the (4, N) -> (N, 4) transpose into the kernel: for small N this is a
    # single XLU transpose within one padded (8,128) vreg tile + one store, and the
    # wrapper-side XLA transpose op (its own launch + HBM round trip) disappears.
    o_ref[...] = sm.T.astype(o_ref.dtype)


def _padded_vmem_bytes(rows, cols, dtype_bytes=4):
    """Bytes a (rows, cols) f32 array actually occupies in (8,128)-tiled VMEM."""
    return pl.cdiv(rows, 8) * 8 * pl.cdiv(cols, 128) * 128 * dtype_bytes


@functools.partial(jax.jit)
def ga_generalist_forward(x, w):
    """x: (N, 8) f32, w: (4, 8) f32 (PyTorch Linear layout) -> (N, 4) f32."""
    n, in_f = x.shape
    out_f = w.shape[0]

    # VMEM footprint with tile padding: x (N,8) pads 8->128 lanes, out (N,4) pads
    # 4->128 lanes, w (4,8) pads to one full tile, plus the (4,N) intermediate.
    buf_bytes = (
        _padded_vmem_bytes(n, in_f)        # x
        + _padded_vmem_bytes(out_f, in_f)  # w
        + _padded_vmem_bytes(n, out_f)     # output
        + _padded_vmem_bytes(out_f, n)     # y_t / softmax intermediate
    )
    # Cap at the chip's real per-core VMEM capacity (64 MiB on v7x, 128 MiB on
    # v5e/v6e) with headroom for compiler scratch.
    try:
        vmem_cap = int(pltpu.get_tpu_info().vmem_capacity_bytes)
    except Exception:
        vmem_cap = 64 << 20
    vmem_limit = int(min(max(2 * buf_bytes + (1 << 20), 4 << 20), (vmem_cap * 3) // 4))

    cost = pl.CostEstimate(
        flops=2 * n * in_f * out_f + 4 * n * out_f,   # matmul + softmax elementwise
        transcendentals=n * out_f,                    # exp
        bytes_accessed=4 * (n * in_f + out_f * in_f + n * out_f),
    )

    # Whole-array VMEM operands, no grid => no pointless double-buffering or DMA
    # descriptor churn for a single-shot op.
    return pl.pallas_call(
        _ga_generalist_kernel,
        out_shape=jax.ShapeDtypeStruct((n, out_f), jnp.float32),
        in_specs=[
            pl.BlockSpec(memory_space=pltpu.MemorySpace.VMEM),
            pl.BlockSpec(memory_space=pltpu.MemorySpace.VMEM),
        ],
        out_specs=pl.BlockSpec(memory_space=pltpu.MemorySpace.VMEM),
        compiler_params=pltpu.CompilerParams(vmem_limit_bytes=vmem_limit),
        cost_estimate=cost,
    )(x, w)


def ga_generalist_ref(x, w):
    y = x @ w.T
    y = y - jnp.max(y, axis=0, keepdims=True)
    e = jnp.exp(y)
    return e / jnp.sum(e, axis=0, keepdims=True)


if __name__ == "__main__":
    key = jax.random.PRNGKey(0)
    k_x, k_w = jax.random.split(key)

    # Small shapes consistent with the module: batch=8, in_features=8, out_features=4.
    x = jax.random.normal(k_x, (8, 8), dtype=jnp.float32)
    bound = 1.0 / jnp.sqrt(8.0)
    w = jax.random.uniform(k_w, (4, 8), dtype=jnp.float32, minval=-bound, maxval=bound)

    out = jax.block_until_ready(ga_generalist_forward(x, w))
    ref = ga_generalist_ref(x, w)

    assert out.shape == (8, 4)
    # Exact divide in the kernel -> tight tolerance.
    assert jnp.allclose(out, ref, atol=1e-5, rtol=1e-5), float(jnp.max(jnp.abs(out - ref)))
    # softmax over dim=0 => each column sums to 1
    assert jnp.allclose(jnp.sum(out, axis=0), jnp.ones((4,), jnp.float32), atol=1e-5)

    print("KERNEL_OK")
</pallas_src>

<mosaic_0001>
module attributes {stable_mosaic.version = 11 : i64} {
  func.func @_ga_generalist_kernel(%arg0: memref<8x8xf32, #tpu.memory_space<vmem>>, %arg1: memref<4x8xf32, #tpu.memory_space<vmem>>, %arg2: memref<8x4xf32, #tpu.memory_space<vmem>>) attributes {dimension_semantics = [], scalar_prefetch = 0 : i64, scratch_operands = 0 : i64, tpu.core_type = #tpu.core_type<tc>} {
    %c0 = arith.constant 0 : index
    %c0_0 = arith.constant 0 : index
    %0 = vector.load %arg0[%c0, %c0_0] : memref<8x8xf32, #tpu.memory_space<vmem>>, vector<8x8xf32>
    %c0_1 = arith.constant 0 : index
    %c0_2 = arith.constant 0 : index
    %1 = vector.load %arg1[%c0_1, %c0_2] : memref<4x8xf32, #tpu.memory_space<vmem>>, vector<4x8xf32>
    %cst = arith.constant dense<0.000000e+00> : vector<4x8xf32>
    %2 = tpu.matmul %1, %0, %cst {dimension_numbers = #tpu.dot_dimension_numbers<[1], [1], [0], [0], [0, 0, 1, 0], [], []>} : vector<4x8xf32>, vector<8x8xf32>, vector<4x8xf32> -> vector<4x8xf32>
    %cst_3 = arith.constant dense<0xFF800000> : vector<4xf32>
    %3 = vector.multi_reduction <maximumf>, %2, %cst_3 [1] : vector<4x8xf32> to vector<4xf32>
    %4 = vector.shape_cast %3 : vector<4xf32> to vector<4x1xf32>
    %5 = vector.broadcast %4 : vector<4x1xf32> to vector<4x8xf32>
    %6 = arith.subf %2, %5 : vector<4x8xf32>
    %7 = math.exp %6 : vector<4x8xf32>
    %cst_4 = arith.constant dense<0.000000e+00> : vector<4xf32>
    %8 = vector.multi_reduction <add>, %7, %cst_4 [1] : vector<4x8xf32> to vector<4xf32>
    %9 = vector.shape_cast %8 : vector<4xf32> to vector<4x1xf32>
    %10 = vector.broadcast %9 : vector<4x1xf32> to vector<4x8xf32>
    %11 = arith.divf %7, %10 : vector<4x8xf32>
    %12 = tpu.transpose %11, [1, 0] : vector<4x8xf32> -> vector<8x4xf32>
    %c0_5 = arith.constant 0 : index
    %c0_6 = arith.constant 0 : index
    %13 = vector.load %arg2[%c0_5, %c0_6] : memref<8x4xf32, #tpu.memory_space<vmem>>, vector<8x4xf32>
    tpu.vector_store %arg2[%c0_5, %c0_6], %12 {strides = array<i32>} : memref<8x4xf32, #tpu.memory_space<vmem>>, vector<8x4xf32>,
    return
  }
}

</mosaic_0001>

<bundles_post_ra>
// kernel: ga_generalist_forward.1
= control target key start
LH: loop header
LB: loop body
LE: loop exit
PB: predicated region body
PF: predicated region fallthrough
CT: control target
= control target key end

     0   :  { %7 = vsyncpa [#allocation3], 0  ;;  %s277_s0 = inlined_call_operand.hbm [shape: f32[8,8], index: 0, kind: input, shape index: {}]   ;;  %s278_s1 = inlined_call_operand.hbm [shape: f32[4,8], index: 1, kind: input, shape index: {}]   ;;  %s279_s2 = inlined_call_operand.vmem [shape: f32[8,4], index: 2, kind: output, shape index: {}]  }
   0x1   :  { %8 = vsyncpa [#allocation5], 0  ;;  %s231_s9 = smov [#allocation2]   ;;  %s232_s11 = smov [#allocation4]  }
   0x2   :  { %s15_s10 = sshll.u32 %s231_s9, 4  ;;  %s25_s12 = sshll.u32 %s232_s11, 4  ;;  %s16_s10 = int_to_ptr.vmem [resolvable:$true] %s15_s10  ;;  %s26_s12 = int_to_ptr.vmem [resolvable:$true] %s25_s12 }
   0x3   :  { %s183_s15 = scalar_lea.hbm %s277_s0, 128 }
   0x4   :  { %p184_p0 = scmp.ne.s32.totalorder %s277_s0, %s183_s15  ;;  %p187_p1 = scmp.lt.u32.totalorder %s183_s15, %s277_s0 }
   0x6   :  { %p189_p2 = pnand %p187_p1, %p184_p0 }
   0x8   :  { %192 = shalt.err (!%p189_p2)
}
   0x9   :  { %s193_s20 = scalar_lea.vmem %s16_s10, 128  ;;  %p198_p4 = scmp.lt.s32.totalorder %s16_s10, %s16_s10 }
   0xa   :  { %p194_p3 = scmp.ne.s32.totalorder %s16_s10, %s193_s20  ;;  %p199_p5 = scmp.lt.s32.totalorder %s193_s20, %s193_s20 }
   0xc   :  { %p200_p6 = por %p199_p5, %p198_p4 }
   0xe   :  { %p201_p7 = pnand %p200_p6, %p194_p3 }
  0x10   :  { %204 = shalt.err (!%p201_p7)
}
  0x11   :  { %18 = dma.hbm_to_vmem [thread:$0]  %s277_s0, 128, %s16_s10, [#allocation3]  }
  0x12   :  { %s205_s25 = scalar_lea.hbm %s278_s1, 64 }
  0x13   :  { %p206_p8 = scmp.ne.s32.totalorder %s278_s1, %s205_s25  ;;  %p209_p9 = scmp.lt.u32.totalorder %s205_s25, %s278_s1 }
  0x15   :  { %p211_p10 = pnand %p209_p9, %p206_p8 }
  0x17   :  { %214 = shalt.err (!%p211_p10)
}
  0x18   :  { %s215_s30 = scalar_lea.vmem %s26_s12, 64  ;;  %p220_p12 = scmp.lt.s32.totalorder %s26_s12, %s26_s12 }
  0x19   :  { %p216_p11 = scmp.ne.s32.totalorder %s26_s12, %s215_s30  ;;  %p221_p13 = scmp.lt.s32.totalorder %s215_s30, %s215_s30 }
  0x1b   :  { %p222_p0 = por %p221_p13, %p220_p12 }
  0x1d   :  { %p223_p1 = pnand %p222_p0, %p216_p11 }
  0x1f   :  { %226 = shalt.err (!%p223_p1)
}
  0x20   :  { %28 = dma.hbm_to_vmem [thread:$0]  %s278_s1, 64, %s26_s12, [#allocation5]  }
  0x21   :  { %227 = dma.done.wait [#allocation3], 128  }
  0x22   :  { %228 = vsyncadd [#allocation3], 4294967168 }
  0x23   :  { %229 = dma.done.wait [#allocation5], 64  }
  0x24   :  { %230 = vsyncadd [#allocation5], 4294967232  ;;  %v233_v0 = vmov 0.0   ;;  %vm234_vm0 = vmmov 0   ;;  %vm37_vm1 = vcmask 64512   ;;  %v35_v1 = vld [vmem:[#allocation2] sm:$0xff] }
  0x25   :  { %170 = vmatprep.subr.mxu0 %v233_v0  ;;  %172 = vmatprep.mubr.msk.f32.mxu0 %vm234_vm0, %v233_v0  ;;  %v36_v2 = vld [vmem:[#allocation4] sm:$0xf]  ;;  %vm114_vm2 = vcmask 60416   ;;  %vm158_vm3 = vcmask 31744  }
  0x26   :  { %171 = vmatpush3.xpose.msk.msra.mxu0 %vm37_vm1, %v35_v1 }
  0x29   :  { %173 = vmatmul.mubr.msk.f32.vlgmr.msra.gmra.mrb[0].mxu0 %vm37_vm1, %v36_v2 }
  0xfc   :  { %v110_v3 = vpop.f32.mrb[0].mxu0 }
  0xfd   :  { %v174_v4 = vpop.f32.mrb[1].mxu0  ;;  %v115_v5 = vsel %vm114_vm2, %v110_v3, -inf }
  0xfe   :  { %116 = vmax.xlane.f32.xlu0 %v115_v5 }
 0x18b   :  { %v117_v6 = vpop.xlane.xlu0 %116 }
 0x18c   :  { %v118_v7 = vsub.f32 %v110_v3, %v117_v6 }
 0x18e   :  { %v119_v8 = vmul.f32 1.442695, %v118_v7 }
 0x190   :  { %179 = vpow2.f32 %v119_v8 }
 0x19a   :  { %v180_v9 = vpop.eup %179 }
 0x19b   :  { %v121_v10 = vsel %vm114_vm2, %v180_v9, 0.0 }
 0x19c   :  { %122 = vadd.xlane.f32.xlu0 %v121_v10 }
 0x229   :  { %v123_v11 = vpop.xlane.xlu0 %122 }
 0x22a   :  { %181 = vrcp.f32 %v123_v11 }
 0x234   :  { %v182_v12 = vpop.eup %181 }
 0x235   :  { %v125_v13 = vmul.f32 %v182_v12, %v180_v9 }
 0x237   :  { %126 = vxpose.xlu1.b32.start.end [1/1] (short) (narrow) %v125_v13, 8 }
 0x2b7   :  { %v142_v14 = vpop.trf.xlu1 }
 0x2b8   :  { %159 = vst.msk [vmem:[%s279_s2] sm:$0xff] %vm158_vm3, %v142_v14 }
 0x2b9   :  { %164 = vsyncpa [#allocation3], 1 }
 0x2ba   :  { %165 = vsyncpa [#allocation5], 1 }

</bundles_post_ra>
